<compile_context>
chip_gen: v7x
topology: tpu7x:2x2x1
jax: 0.10.0
libtpu: 0.0.40
codegen_flags: <defaults>
</compile_context>

<pallas_src>
import functools

import jax
import jax.numpy as jnp
from jax import lax
from jax.experimental import pallas as pl
from jax.experimental.pallas import tpu as pltpu


def _deltas_kernel(o_ref, t_ref, cnt_ref, s1_ref, s2_ref, s3_ref,
                   *, n_cols, tile_cols, need_mask):
    """Accumulate per-batch valid-pixel counts and threshold counts.

    o_ref, t_ref : (1, R, tile_cols) tiles of the (B, R, n_cols) inputs.
    cnt_ref, s*_ref : (1, R, 1) resident per-batch accumulators.
    """
    k = pl.program_id(1)               # column-chunk index (reduction axis)

    @pl.when(k == 0)
    def _init():
        cnt_ref[...] = jnp.zeros_like(cnt_ref)
        s1_ref[...] = jnp.zeros_like(s1_ref)
        s2_ref[...] = jnp.zeros_like(s2_ref)
        s3_ref[...] = jnp.zeros_like(s3_ref)

    o = o_ref[0].astype(jnp.float32)   # (R, tile_cols)
    t = t_ref[0].astype(jnp.float32)

    valid = t > 0.0                    # valid-pixel mask (bool)
    if need_mask:
        # Ragged last column tile: out-of-bounds block contents are
        # unspecified, so mask them out (any garbage, incl. NaN, is killed
        # because every contribution below is AND-ed with `valid`).
        col = lax.broadcasted_iota(jnp.int32, t.shape, 1) + k * tile_cols
        valid = valid & (col < n_cols)

    # Reference:  rel = max(t*v/(o*v + 1e-6), o*v/(t*v + 1e-6));  (rel < T)*v
    # On valid pixels (t > 0, v == 1) this equals, without any divides:
    #     (max(t*(t+eps), o*(o+eps)) < T*(o+eps)*(t+eps))  |  (o+eps < 0)
    # (the OR term covers negative predictions exactly; o+eps == 0 -> False,
    #  matching the +inf ratio in the reference).  Invalid pixels are zeroed
    # by the AND with `valid`, same as the reference's trailing `* val`.
    eps = jnp.float32(1e-6)
    a = o + eps
    b = t + eps
    lhs = jnp.maximum(t * b, o * a)
    rhs = a * b
    a_neg = a < 0.0

    def hits(thr):
        below = (lhs < jnp.float32(thr) * rhs) | a_neg
        return jnp.where(below & valid, 1.0, 0.0)

    val_f = jnp.where(valid, 1.0, 0.0)
    cnt_ref[...] += jnp.sum(val_f, axis=-1, keepdims=True)[None]
    s1_ref[...] += jnp.sum(hits(1.25), axis=-1, keepdims=True)[None]
    s2_ref[...] += jnp.sum(hits(1.25 ** 2), axis=-1, keepdims=True)[None]
    s3_ref[...] += jnp.sum(hits(1.25 ** 3), axis=-1, keepdims=True)[None]


@functools.partial(jax.jit, static_argnames=("rows", "tile_cols"))
def deltas_pallas(outputs, target, *, rows=8, tile_cols=65536):
    """Pallas implementation of Deltas.forward -> (delta1, delta2, delta3)."""
    B = outputs.shape[0]
    R = rows                                       # sublane-packing rows (x8)
    o2 = outputs.reshape(B, -1)                    # native dtype on the wire
    t2 = target.reshape(B, -1)
    N = o2.shape[1]

    # Pad the pixel axis only up to a multiple of R (<= R-1 zeros per batch)
    # so it can be reshaped to (B, R, n_cols).  Zero targets are invalid
    # pixels and contribute nothing.  Typical C*H*W is already divisible by 8
    # so this is a no-op (no extra HBM copy).
    n_pad = pl.cdiv(N, R) * R
    if n_pad != N:
        o2 = jnp.pad(o2, ((0, 0), (0, n_pad - N)))
        t2 = jnp.pad(t2, ((0, 0), (0, n_pad - N)))
    n_cols = n_pad // R
    o3 = o2.reshape(B, R, n_cols)
    t3 = t2.reshape(B, R, n_cols)

    # Big column tiles to amortise per-step overhead; ragged tail handled
    # in-kernel (no full-array padding copy).
    if n_cols <= tile_cols:
        tc = n_cols                                # full dim -> no 128 constraint
        kc = 1
    else:
        tc = tile_cols                             # multiple of 128
        kc = pl.cdiv(n_cols, tc)
    need_mask = (kc * tc != n_cols)

    kernel = functools.partial(
        _deltas_kernel, n_cols=n_cols, tile_cols=tc, need_mask=need_mask)

    stat_shape = jax.ShapeDtypeStruct((B, R, 1), jnp.float32)
    cnt, s1, s2, s3 = pl.pallas_call(
        kernel,
        out_shape=(stat_shape, stat_shape, stat_shape, stat_shape),
        grid_spec=pltpu.PrefetchScalarGridSpec(
            num_scalar_prefetch=0,
            grid=(B, kc),
            in_specs=[
                pl.BlockSpec((1, R, tc), lambda b, k: (b, 0, k)),
                pl.BlockSpec((1, R, tc), lambda b, k: (b, 0, k)),
            ],
            out_specs=[pl.BlockSpec((1, R, 1), lambda b, k: (b, 0, 0))] * 4,
        ),
        compiler_params=pltpu.CompilerParams(
            dimension_semantics=("parallel", "arbitrary"),
            vmem_limit_bytes=64 * 1024 * 1024,
        ),
    )(o3, t3)

    # Tiny scalar glue: fold the R sublane partials, then
    # delta_i = mean over batch of (count below threshold / valid count).
    cnt_b = jnp.sum(cnt[:, :, 0], axis=-1)          # (B,)
    d1 = jnp.mean(jnp.sum(s1[:, :, 0], axis=-1) / cnt_b)
    d2 = jnp.mean(jnp.sum(s2[:, :, 0], axis=-1) / cnt_b)
    d3 = jnp.mean(jnp.sum(s3[:, :, 0], axis=-1) / cnt_b)
    return d1, d2, d3


def deltas_reference(outputs, target):
    """Pure-JAX mirror of the PyTorch forward (for validation)."""
    val = (target > 0).astype(jnp.float32)
    rel = jnp.maximum(target * val / (outputs * val + 1e-6),
                      outputs * val / (target * val + 1e-6))
    B = target.shape[0]
    cnt = jnp.sum(val.reshape(B, 1, -1), -1, keepdims=True)
    res = []
    for i in (1, 2, 3):
        r = (rel < 1.25 ** i).astype(jnp.float32) * val
        delta = jnp.sum(r.reshape(B, 1, -1), -1, keepdims=True) / cnt
        res.append(jnp.mean(delta))
    return tuple(res)


if __name__ == "__main__":
    key = jax.random.PRNGKey(0)

    def make_inputs(k, shape):
        k_out, k_tgt, k_msk = jax.random.split(k, 3)
        out = jax.random.uniform(k_out, shape, jnp.float32, 0.5, 10.0)
        depth = jax.random.uniform(k_tgt, shape, jnp.float32, 0.5, 10.0)
        mask = jax.random.bernoulli(k_msk, 0.8, shape)
        tgt = jnp.where(mask, depth, 0.0)
        return out, tgt

    k1, k2 = jax.random.split(key)

    # Main case: B=2, C=4, H=16, W=16 (pixel count divisible by 8, one tile).
    out1, tgt1 = make_inputs(k1, (2, 4, 16, 16))
    got1 = deltas_pallas(out1, tgt1)
    jax.block_until_ready(got1)
    ref1 = deltas_reference(out1, tgt1)
    for g, r in zip(got1, ref1):
        # Loose-ish tolerance: multiply-form vs divide-form threshold tests
        # can (rarely) disagree on a pixel sitting ulps from 1.25**i.
        assert jnp.allclose(g, r, atol=2e-3), (g, r)

    # Ragged case: pixel count not divisible by 8 and columns not divisible
    # by the tile -> exercises the pad-to-rows and in-kernel tail-mask paths.
    out2, tgt2 = make_inputs(k2, (2, 3, 20, 23))
    got2 = deltas_pallas(out2, tgt2, tile_cols=128)
    jax.block_until_ready(got2)
    ref2 = deltas_reference(out2, tgt2)
    for g, r in zip(got2, ref2):
        assert jnp.allclose(g, r, atol=2e-3), (g, r)

    print("KERNEL_OK")
</pallas_src>

<mosaic_0001>
module attributes {stable_mosaic.version = 11 : i64} {
  func.func @_deltas_kernel(%arg0: i32, %arg1: i32, %arg2: memref<1x8x128xf32, #tpu.memory_space<vmem>>, %arg3: memref<1x8x128xf32, #tpu.memory_space<vmem>>, %arg4: memref<1x8x1xf32, #tpu.memory_space<vmem>>, %arg5: memref<1x8x1xf32, #tpu.memory_space<vmem>>, %arg6: memref<1x8x1xf32, #tpu.memory_space<vmem>>, %arg7: memref<1x8x1xf32, #tpu.memory_space<vmem>>) attributes {dimension_semantics = [#tpu.dimension_semantics<parallel>, #tpu.dimension_semantics<arbitrary>], iteration_bounds = array<i64: 2, 1>, scalar_prefetch = 0 : i64, scratch_operands = 0 : i64, tpu.core_type = #tpu.core_type<tc>, window_params = [{transform_indices = @transform_0, window_bounds = array<i64: 1, 8, 128>}, {transform_indices = @transform_1, window_bounds = array<i64: 1, 8, 128>}, {transform_indices = @transform_2, window_bounds = array<i64: 1, 8, 1>}, {transform_indices = @transform_3, window_bounds = array<i64: 1, 8, 1>}, {transform_indices = @transform_4, window_bounds = array<i64: 1, 8, 1>}, {transform_indices = @transform_5, window_bounds = array<i64: 1, 8, 1>}]} {
    %c0_i32 = arith.constant 0 : i32
    %0 = arith.cmpi eq, %arg1, %c0_i32 : i32
    %1 = arith.extui %0 : i1 to i32
    %c0_i32_0 = arith.constant 0 : i32
    %2 = arith.cmpi ne, %1, %c0_i32_0 : i32
    scf.if %2 {
      %cst_48 = arith.constant 0.000000e+00 : f32
      %70 = vector.broadcast %cst_48 : f32 to vector<1x8x1xf32>
      %c0_49 = arith.constant 0 : index
      %c0_50 = arith.constant 0 : index
      %c0_51 = arith.constant 0 : index
      %71 = vector.load %arg4[%c0_49, %c0_50, %c0_51] : memref<1x8x1xf32, #tpu.memory_space<vmem>>, vector<1x8x1xf32>
      tpu.vector_store %arg4[%c0_49, %c0_50, %c0_51], %70 {strides = array<i32>} : memref<1x8x1xf32, #tpu.memory_space<vmem>>, vector<1x8x1xf32>,
      %cst_52 = arith.constant 0.000000e+00 : f32
      %72 = vector.broadcast %cst_52 : f32 to vector<1x8x1xf32>
      %c0_53 = arith.constant 0 : index
      %c0_54 = arith.constant 0 : index
      %c0_55 = arith.constant 0 : index
      %73 = vector.load %arg5[%c0_53, %c0_54, %c0_55] : memref<1x8x1xf32, #tpu.memory_space<vmem>>, vector<1x8x1xf32>
      tpu.vector_store %arg5[%c0_53, %c0_54, %c0_55], %72 {strides = array<i32>} : memref<1x8x1xf32, #tpu.memory_space<vmem>>, vector<1x8x1xf32>,
      %cst_56 = arith.constant 0.000000e+00 : f32
      %74 = vector.broadcast %cst_56 : f32 to vector<1x8x1xf32>
      %c0_57 = arith.constant 0 : index
      %c0_58 = arith.constant 0 : index
      %c0_59 = arith.constant 0 : index
      %75 = vector.load %arg6[%c0_57, %c0_58, %c0_59] : memref<1x8x1xf32, #tpu.memory_space<vmem>>, vector<1x8x1xf32>
      tpu.vector_store %arg6[%c0_57, %c0_58, %c0_59], %74 {strides = array<i32>} : memref<1x8x1xf32, #tpu.memory_space<vmem>>, vector<1x8x1xf32>,
      %cst_60 = arith.constant 0.000000e+00 : f32
      %76 = vector.broadcast %cst_60 : f32 to vector<1x8x1xf32>
      %c0_61 = arith.constant 0 : index
      %c0_62 = arith.constant 0 : index
      %c0_63 = arith.constant 0 : index
      %77 = vector.load %arg7[%c0_61, %c0_62, %c0_63] : memref<1x8x1xf32, #tpu.memory_space<vmem>>, vector<1x8x1xf32>
      tpu.vector_store %arg7[%c0_61, %c0_62, %c0_63], %76 {strides = array<i32>} : memref<1x8x1xf32, #tpu.memory_space<vmem>>, vector<1x8x1xf32>,
    } else {
    }
    %c0 = arith.constant 0 : index
    %c0_1 = arith.constant 0 : index
    %c0_2 = arith.constant 0 : index
    %3 = vector.load %arg2[%c0, %c0_1, %c0_2] : memref<1x8x128xf32, #tpu.memory_space<vmem>>, vector<1x8x128xf32>
    %4 = vector.shape_cast %3 : vector<1x8x128xf32> to vector<8x128xf32>
    %c0_3 = arith.constant 0 : index
    %c0_4 = arith.constant 0 : index
    %c0_5 = arith.constant 0 : index
    %5 = vector.load %arg3[%c0_3, %c0_4, %c0_5] : memref<1x8x128xf32, #tpu.memory_space<vmem>>, vector<1x8x128xf32>
    %6 = vector.shape_cast %5 : vector<1x8x128xf32> to vector<8x128xf32>
    %cst = arith.constant 0.000000e+00 : f32
    %7 = vector.broadcast %cst : f32 to vector<8x128xf32>
    %8 = arith.cmpf ogt, %6, %7 : vector<8x128xf32>
    %cst_6 = arith.constant 9.99999997E-7 : f32
    %9 = vector.broadcast %cst_6 : f32 to vector<8x128xf32>
    %10 = arith.addf %4, %9 : vector<8x128xf32>
    %cst_7 = arith.constant 9.99999997E-7 : f32
    %11 = vector.broadcast %cst_7 : f32 to vector<8x128xf32>
    %12 = arith.addf %6, %11 : vector<8x128xf32>
    %13 = arith.mulf %6, %12 : vector<8x128xf32>
    %14 = arith.mulf %4, %10 : vector<8x128xf32>
    %15 = arith.maximumf %13, %14 : vector<8x128xf32>
    %16 = arith.mulf %10, %12 : vector<8x128xf32>
    %cst_8 = arith.constant 0.000000e+00 : f32
    %17 = vector.broadcast %cst_8 : f32 to vector<8x128xf32>
    %18 = arith.cmpf olt, %10, %17 : vector<8x128xf32>
    %cst_9 = arith.constant 1.000000e+00 : f32
    %cst_10 = arith.constant 0.000000e+00 : f32
    %19 = vector.broadcast %cst_9 : f32 to vector<8x128xf32>
    %20 = vector.broadcast %cst_10 : f32 to vector<8x128xf32>
    %21 = arith.select %8, %19, %20 : vector<8x128xi1>, vector<8x128xf32>
    %c0_11 = arith.constant 0 : index
    %c0_12 = arith.constant 0 : index
    %c0_13 = arith.constant 0 : index
    %22 = vector.load %arg4[%c0_11, %c0_12, %c0_13] : memref<1x8x1xf32, #tpu.memory_space<vmem>>, vector<1x8x1xf32>
    %cst_14 = arith.constant dense<0.000000e+00> : vector<8xf32>
    %23 = vector.multi_reduction <add>, %21, %cst_14 [1] : vector<8x128xf32> to vector<8xf32>
    %24 = vector.shape_cast %23 : vector<8xf32> to vector<8x1xf32>
    %25 = vector.shape_cast %24 : vector<8x1xf32> to vector<1x8x1xf32>
    %26 = arith.addf %22, %25 : vector<1x8x1xf32>
    %c0_15 = arith.constant 0 : index
    %c0_16 = arith.constant 0 : index
    %c0_17 = arith.constant 0 : index
    %27 = vector.load %arg4[%c0_15, %c0_16, %c0_17] : memref<1x8x1xf32, #tpu.memory_space<vmem>>, vector<1x8x1xf32>
    tpu.vector_store %arg4[%c0_15, %c0_16, %c0_17], %26 {strides = array<i32>} : memref<1x8x1xf32, #tpu.memory_space<vmem>>, vector<1x8x1xf32>,
    %c0_18 = arith.constant 0 : index
    %c0_19 = arith.constant 0 : index
    %c0_20 = arith.constant 0 : index
    %28 = vector.load %arg5[%c0_18, %c0_19, %c0_20] : memref<1x8x1xf32, #tpu.memory_space<vmem>>, vector<1x8x1xf32>
    %cst_21 = arith.constant 1.250000e+00 : f32
    %29 = vector.broadcast %cst_21 : f32 to vector<8x128xf32>
    %30 = arith.mulf %29, %16 : vector<8x128xf32>
    %31 = arith.cmpf olt, %15, %30 : vector<8x128xf32>
    %32 = arith.ori %31, %18 : vector<8x128xi1>
    %33 = arith.andi %32, %8 : vector<8x128xi1>
    %cst_22 = arith.constant 1.000000e+00 : f32
    %cst_23 = arith.constant 0.000000e+00 : f32
    %34 = vector.broadcast %cst_22 : f32 to vector<8x128xf32>
    %35 = vector.broadcast %cst_23 : f32 to vector<8x128xf32>
    %36 = arith.select %33, %34, %35 : vector<8x128xi1>, vector<8x128xf32>
    %cst_24 = arith.constant dense<0.000000e+00> : vector<8xf32>
    %37 = vector.multi_reduction <add>, %36, %cst_24 [1] : vector<8x128xf32> to vector<8xf32>
    %38 = vector.shape_cast %37 : vector<8xf32> to vector<8x1xf32>
    %39 = vector.shape_cast %38 : vector<8x1xf32> to vector<1x8x1xf32>
    %40 = arith.addf %28, %39 : vector<1x8x1xf32>
    %c0_25 = arith.constant 0 : index
    %c0_26 = arith.constant 0 : index
    %c0_27 = arith.constant 0 : index
    %41 = vector.load %arg5[%c0_25, %c0_26, %c0_27] : memref<1x8x1xf32, #tpu.memory_space<vmem>>, vector<1x8x1xf32>
    tpu.vector_store %arg5[%c0_25, %c0_26, %c0_27], %40 {strides = array<i32>} : memref<1x8x1xf32, #tpu.memory_space<vmem>>, vector<1x8x1xf32>,
    %c0_28 = arith.constant 0 : index
    %c0_29 = arith.constant 0 : index
    %c0_30 = arith.constant 0 : index
    %42 = vector.load %arg6[%c0_28, %c0_29, %c0_30] : memref<1x8x1xf32, #tpu.memory_space<vmem>>, vector<1x8x1xf32>
    %cst_31 = arith.constant 1.562500e+00 : f32
    %43 = vector.broadcast %cst_31 : f32 to vector<8x128xf32>
    %44 = arith.mulf %43, %16 : vector<8x128xf32>
    %45 = arith.cmpf olt, %15, %44 : vector<8x128xf32>
    %46 = arith.ori %45, %18 : vector<8x128xi1>
    %47 = arith.andi %46, %8 : vector<8x128xi1>
    %cst_32 = arith.constant 1.000000e+00 : f32
    %cst_33 = arith.constant 0.000000e+00 : f32
    %48 = vector.broadcast %cst_32 : f32 to vector<8x128xf32>
    %49 = vector.broadcast %cst_33 : f32 to vector<8x128xf32>
    %50 = arith.select %47, %48, %49 : vector<8x128xi1>, vector<8x128xf32>
    %cst_34 = arith.constant dense<0.000000e+00> : vector<8xf32>
    %51 = vector.multi_reduction <add>, %50, %cst_34 [1] : vector<8x128xf32> to vector<8xf32>
    %52 = vector.shape_cast %51 : vector<8xf32> to vector<8x1xf32>
    %53 = vector.shape_cast %52 : vector<8x1xf32> to vector<1x8x1xf32>
    %54 = arith.addf %42, %53 : vector<1x8x1xf32>
    %c0_35 = arith.constant 0 : index
    %c0_36 = arith.constant 0 : index
    %c0_37 = arith.constant 0 : index
    %55 = vector.load %arg6[%c0_35, %c0_36, %c0_37] : memref<1x8x1xf32, #tpu.memory_space<vmem>>, vector<1x8x1xf32>
    tpu.vector_store %arg6[%c0_35, %c0_36, %c0_37], %54 {strides = array<i32>} : memref<1x8x1xf32, #tpu.memory_space<vmem>>, vector<1x8x1xf32>,
    %c0_38 = arith.constant 0 : index
    %c0_39 = arith.constant 0 : index
    %c0_40 = arith.constant 0 : index
    %56 = vector.load %arg7[%c0_38, %c0_39, %c0_40] : memref<1x8x1xf32, #tpu.memory_space<vmem>>, vector<1x8x1xf32>
    %cst_41 = arith.constant 1.953125 : f32
    %57 = vector.broadcast %cst_41 : f32 to vector<8x128xf32>
    %58 = arith.mulf %57, %16 : vector<8x128xf32>
    %59 = arith.cmpf olt, %15, %58 : vector<8x128xf32>
    %60 = arith.ori %59, %18 : vector<8x128xi1>
    %61 = arith.andi %60, %8 : vector<8x128xi1>
    %cst_42 = arith.constant 1.000000e+00 : f32
    %cst_43 = arith.constant 0.000000e+00 : f32
    %62 = vector.broadcast %cst_42 : f32 to vector<8x128xf32>
    %63 = vector.broadcast %cst_43 : f32 to vector<8x128xf32>
    %64 = arith.select %61, %62, %63 : vector<8x128xi1>, vector<8x128xf32>
    %cst_44 = arith.constant dense<0.000000e+00> : vector<8xf32>
    %65 = vector.multi_reduction <add>, %64, %cst_44 [1] : vector<8x128xf32> to vector<8xf32>
    %66 = vector.shape_cast %65 : vector<8xf32> to vector<8x1xf32>
    %67 = vector.shape_cast %66 : vector<8x1xf32> to vector<1x8x1xf32>
    %68 = arith.addf %56, %67 : vector<1x8x1xf32>
    %c0_45 = arith.constant 0 : index
    %c0_46 = arith.constant 0 : index
    %c0_47 = arith.constant 0 : index
    %69 = vector.load %arg7[%c0_45, %c0_46, %c0_47] : memref<1x8x1xf32, #tpu.memory_space<vmem>>, vector<1x8x1xf32>
    tpu.vector_store %arg7[%c0_45, %c0_46, %c0_47], %68 {strides = array<i32>} : memref<1x8x1xf32, #tpu.memory_space<vmem>>, vector<1x8x1xf32>,
    return
  }
  func.func @transform_0(%arg0: i32, %arg1: i32) -> (i32, i32, i32) {
    %c0_i32 = arith.constant 0 : i32
    %c0_i32_0 = arith.constant 0 : i32
    return %arg0, %c0_i32, %arg1 : i32, i32, i32
  }
  func.func @transform_1(%arg0: i32, %arg1: i32) -> (i32, i32, i32) {
    %c0_i32 = arith.constant 0 : i32
    %c0_i32_0 = arith.constant 0 : i32
    return %arg0, %c0_i32, %arg1 : i32, i32, i32
  }
  func.func @transform_2(%arg0: i32, %arg1: i32) -> (i32, i32, i32) {
    %c0_i32 = arith.constant 0 : i32
    %c0_i32_0 = arith.constant 0 : i32
    %c0_i32_1 = arith.constant 0 : i32
    return %arg0, %c0_i32, %c0_i32_0 : i32, i32, i32
  }
  func.func @transform_3(%arg0: i32, %arg1: i32) -> (i32, i32, i32) {
    %c0_i32 = arith.constant 0 : i32
    %c0_i32_0 = arith.constant 0 : i32
    %c0_i32_1 = arith.constant 0 : i32
    return %arg0, %c0_i32, %c0_i32_0 : i32, i32, i32
  }
  func.func @transform_4(%arg0: i32, %arg1: i32) -> (i32, i32, i32) {
    %c0_i32 = arith.constant 0 : i32
    %c0_i32_0 = arith.constant 0 : i32
    %c0_i32_1 = arith.constant 0 : i32
    return %arg0, %c0_i32, %c0_i32_0 : i32, i32, i32
  }
  func.func @transform_5(%arg0: i32, %arg1: i32) -> (i32, i32, i32) {
    %c0_i32 = arith.constant 0 : i32
    %c0_i32_0 = arith.constant 0 : i32
    %c0_i32_1 = arith.constant 0 : i32
    return %arg0, %c0_i32, %c0_i32_0 : i32, i32, i32
  }
}

</mosaic_0001>

<bundles_post_ra>
// kernel: deltas_pallas.1
= control target key start
LH: loop header
LB: loop body
LE: loop exit
PB: predicated region body
PF: predicated region fallthrough
CT: control target
= control target key end

     0   :  { %s1383_s0 = inlined_call_operand.hbm [shape: f32[2,8,128], index: 0, kind: input, shape index: {}]   ;;  %s1384_s1 = inlined_call_operand.hbm [shape: f32[2,8,128], index: 1, kind: input, shape index: {}]   ;;  %s1385_s2 = inlined_call_operand.hbm [shape: f32[2,8,1], index: 2, kind: output, shape index: {0}]   ;;  %s1386_s3 = inlined_call_operand.hbm [shape: f32[2,8,1], index: 3, kind: output, shape index: {1}]   ;;  %s1387_s4 = inlined_call_operand.hbm [shape: f32[2,8,1], index: 4, kind: output, shape index: {2}]   ;;  %s1388_s5 = inlined_call_operand.hbm [shape: f32[2,8,1], index: 5, kind: output, shape index: {3}]  }
   0x1   :  { %1395 = sst [smem:[#allocation20_spill]] %s1383_s0 }
   0x2   :  { %1396 = sst [smem:[#allocation21_spill]] %s1384_s1 }
   0x3   :  { %11 = vsyncpa [#allocation3], 0 }
   0x4   :  { %13 = vsyncpa [#allocation3 + $0x1], 0 }
   0x5   :  { %14 = vsyncpa [#allocation6], 0 }
   0x6   :  { %16 = vsyncpa [#allocation6 + $0x1], 0 }
   0x7   :  { %17 = vsyncpa [#allocation4], 0 }
   0x8   :  { %19 = vsyncpa [#allocation4 + $0x1], 0 }
   0x9   :  { %20 = vsyncpa [#allocation9], 0 }
   0xa   :  { %22 = vsyncpa [#allocation9 + $0x1], 0 }
   0xb   :  { %23 = vsyncpa [#allocation12], 0 }
   0xc   :  { %25 = vsyncpa [#allocation12 + $0x1], 0  ;;  %s1028_s18 = smov 0   ;;  %s1030_s19 = smov 0  }
   0xd   :  { %s1032_s20 = smov 0   ;;  %s1034_s21 = smov 0  }
   0xe   :  { %s1036_s22 = smov 0   ;;  %s1038_s23 = smov 0  }
   0xf LB: > { %1397 = sst [smem:[#allocation18_spill]] %s985_s22  ;;  %s1059_s24 = sadd.s32 4294967295, %s989_s23   ;;  %s989_s23 = sphi %s1038_s23, %s31_s23   ;;  %s985_s22 = sphi %s1036_s22, %s1417_s22   ;;  %s981_s21 = sphi %s1034_s21, %s1416_s21   ;;  %s977_s20 = sphi %s1032_s20, %s1420_s20   ;;  %s973_s19 = sphi %s1030_s19, %s1419_s19   ;;  %s969_s18 = sphi %s1028_s18, %s1418_s18  }
  0x10   : > { %s1389_s25 = sadd.s32 4294967294, %s989_s23   ;;  %s43_s26 = sadd.s32 1, %s985_s22 }
  0x11   : > { %s52_s27 = sadd.s32 1, %s977_s20  ;;  %p45_p0 = scmp.ge.s32.totalorder %s43_s26, 2 }
  0x12   : > { %p59_p1 = scmp.ne.s32.totalorder %s977_s20, %s973_s19  ;;  %p60_p2 = scmp.eq.s32.totalorder %s989_s23, 0 }
  0x13   : > { %p65_p3 = scmp.ne.s32.totalorder %s973_s19, %s969_s18  ;;  %s1422_s26 = smov (%p45_p0, %s43_s26), 0 }
  0x14   : > { %1398 = sst [smem:[#allocation19_spill]] %s1422_s26  ;;  %p1071_p4 = por %p60_p2, %p59_p1 }
  0x15   : > { %p66_p5 = scmp.eq.s32.totalorder %s1059_s24, 0  ;;  %s47_s29 = ssub.s32 %s985_s22, %s1422_s26 }
  0x16   : > { %p117_p6 = scmp.eq.s32.totalorder %s1059_s24, 1  ;;  %p50_p7 = scmp.eq.s32.totalorder %s47_s29, 0 }
  0x17   : > { %p1079_p8 = por %p66_p5, %p65_p3  ;;  %p123_p10 = scmp.eq.s32.totalorder %s1389_s25, 1 }
  0x18   : > { %p1083_p9 = por %p117_p6, %p59_p1  ;;  %p700_p13 = scmp.lt.s32.totalorder %s989_s23, 2 }
  0x19   : > { %s1400_s30 = scalar_select %p1079_p8, 1, 0 }
  0x1a   : > { %s1401_s6 = scalar_select %p1083_p9, 1, 0 }
  0x1b   : > { %s1090_s7 = scalar_select %p50_p7, %s977_s20, %s52_s27  }
  0x1c   : > { %p1092_p11 = por %p123_p10, %p65_p3  ;;  %s1099_s9 = sand.u32 1, %s977_s20  }
  0x1d   : > { %s1390_s10 = sshll.u32 %s1099_s9, 3  ;;  %s648_s11 = sshll.u32 %s985_s22, 7 }
  0x1e   : > { %s1402_s8 = scalar_select %p1092_p11, 1, 0 }
  0x1f   : > { %s1403_s0 = sld [smem:[#allocation20_spill]]  ;;  %s225_s15 = scalar_lea.vmem [#allocation2], %s1390_s10 }
  0x20   : > { %s233_s16 = sshll.u32 %s225_s15, 4  ;;  %p1116_p0 = pnand %p700_p13, %p1071_p4  ;;  %s1112_s16 = int_to_ptr.vmem [resolvable:$true] %s233_s16 }
  0x21   : > { %s222_s27 = scalar_lea.sflag [#allocation3], %s1099_s9 }
  0x22   : > { %p753_p5 = pneg %p1116_p0 }
  0x25   : > { %s1108_s14 = scalar_lea.hbm %s1403_s0, %s648_s11  ;;  %s756_s28 = scalar_lea.hbm %s1403_s0, 256 }
  0x26   : > { %s751_s29 = scalar_lea.hbm %s1108_s14, 128  ;;  %p757_p4 = scmp.lt.u32.totalorder %s1108_s14, %s1403_s0 }
  0x27   : > { %p752_p3 = scmp.ne.s32.totalorder %s1108_s14, %s751_s29  ;;  %p758_p10 = scmp.lt.u32.totalorder %s756_s28, %s751_s29 }
  0x28   : > { %p760_p12 = scmp.lt.u32.totalorder %s751_s29, %s1108_s14 }
  0x29   : > { %p754_p6 = pnand %p753_p5, %p752_p3  ;;  %p759_p13 = por %p758_p10, %p757_p4 }
  0x2b   : > { %p755_p7 = pneg %p754_p6  ;;  %p761_p1 = por %p760_p12, %p759_p13 }
  0x2d   : > { %p762_p2 = pnand %p761_p1, %p755_p7 }
  0x2f   : > { %765 = shalt.err (!%p762_p2)
}
  0x30   : > { %s766_s10 = scalar_lea.vmem %s1112_s16, 128  ;;  %s991_s12 = smov [#allocation2]  }
  0x31   : > { %p767_p3 = scmp.ne.s32.totalorder %s1112_s16, %s766_s10  ;;  %s771_s13 = sshll.u32 %s991_s12, 4  ;;  %s772_s13 = int_to_ptr.vmem [resolvable:$false] %s771_s13 }
  0x32   : > { %s773_s25 = scalar_lea.vmem %s772_s13, 256  ;;  %p774_p9 = scmp.lt.s32.totalorder %s1112_s16, %s772_s13 }
  0x33   : > { %p769_p6 = pnand %p767_p3, %p753_p5  ;;  %p775_p4 = scmp.lt.s32.totalorder %s773_s25, %s766_s10 }
  0x35   : > { %p770_p11 = pneg %p769_p6  ;;  %p776_p10 = por %p775_p4, %p774_p9 }
  0x37   : > { %p777_p12 = pnand %p776_p10, %p770_p11 }
  0x39   : > { %780 = shalt.err (!%p777_p12)
}
  0x3a   : > { %683 = dma.hbm_to_vmem [thread:$0]  (!%p1116_p0), %s1108_s14, 128, %s1112_s16, %s222_s27  }
  0x3b   : > { %p1405_p1 = scmp.lt.s32.totalorder %s989_s23, 3  ;;  %p1406_p2 = scmp.ge.s32.totalorder %s989_s23, 1 }
  0x3c   : > { %s1408_s1 = sld [smem:[#allocation21_spill]]  ;;  %s1409_s12 = sshll.u32 %s1099_s9, 3 }
  0x3d   : > { %p1152_p7 = pnand %p1406_p2, %p1405_p1  ;;  %s244_s13 = scalar_lea.vmem [#allocation5], %s1409_s12 }
  0x3e   : > { %s252_s25 = sshll.u32 %s244_s13, 4  ;;  %s241_s14 = scalar_lea.sflag [#allocation6], %s1099_s9  ;;  %s253_s25 = int_to_ptr.vmem [resolvable:$true] %s252_s25 }
  0x3f   : > { %s1407_s29 = scalar_select %p1152_p7, 1, 0 }
  0x42   : > { %s1161_s15 = scalar_lea.hbm %s1408_s1, %s648_s11  ;;  %s786_s11 = scalar_lea.hbm %s1408_s1, 256 }
  0x43   : > { %s781_s16 = scalar_lea.hbm %s1161_s15, 128  ;;  %p787_p3 = scmp.lt.u32.totalorder %s1161_s15, %s1408_s1 }
  0x44   : > { %p782_p9 = scmp.ne.s32.totalorder %s1161_s15, %s781_s16  ;;  %p788_p6 = scmp.lt.u32.totalorder %s786_s11, %s781_s16 }
  0x45   : > { %p790_p10 = scmp.lt.u32.totalorder %s781_s16, %s1161_s15 }
  0x46   : > { %p784_p11 = pnand %p782_p9, %p753_p5  ;;  %p789_p4 = por %p788_p6, %p787_p3 }
  0x48   : > { %p785_p13 = pneg %p784_p11  ;;  %p791_p12 = por %p790_p10, %p789_p4 }
  0x4a   : > { %p792_p1 = pnand %p791_p12, %p785_p13 }
  0x4c   : > { %795 = shalt.err (!%p792_p1)
}
  0x4d   : > { %s796_s9 = scalar_lea.vmem %s253_s25, 128  ;;  %s992_s12 = smov [#allocation5]  }
  0x4e   : > { %p797_p2 = scmp.ne.s32.totalorder %s253_s25, %s796_s9  ;;  %s801_s0 = sshll.u32 %s992_s12, 4  ;;  %s802_s0 = int_to_ptr.vmem [resolvable:$false] %s801_s0 }
  0x4f   : > { %s803_s13 = scalar_lea.vmem %s802_s0, 256  ;;  %p804_p8 = scmp.lt.s32.totalorder %s253_s25, %s802_s0 }
  0x50   : > { %p799_p9 = pnand %p797_p2, %p753_p5  ;;  %p805_p7 = scmp.lt.s32.totalorder %s803_s13, %s796_s9 }
  0x52   : > { %p800_p11 = pneg %p799_p9  ;;  %p806_p3 = por %p805_p7, %p804_p8 }
  0x54   : > { %p807_p6 = pnand %p806_p3, %p800_p11 }
  0x56   : > { %810 = shalt.err (!%p807_p6)
}
  0x57   : > { %686 = dma.hbm_to_vmem [thread:$0]  (!%p1116_p0), %s1161_s15, 128, %s253_s25, %s241_s14  }
  0x58   : > { %p1410_p13 = scmp.ne.s32.totalorder %s1407_s29, 0 }
  0x59   : > { %s1188_s16 = sand.u32 (!%p1410_p13), 1, %s973_s19   ;;  %p1411_p8 = scmp.ne.s32.totalorder (!%p1410_p13), %s1400_s30, 0 }
  0x5a   : > { %261 = sbr.rel (%p1410_p13) target bundleno = 345 (0x159), region = 28  ;;  %s1191_s27 = sshll.u32 (!%p1410_p13), %s1188_s16, 3 }
  0x5b   : > { %s264_s11 = scalar_lea.sflag (!%p1410_p13), [#allocation3], %s1188_s16  ;;  %s267_s10 = scalar_lea.vmem (!%p1410_p13), [#allocation2], %s1191_s27 }
  0x61   : > { %948 = dma.done.wait (%p1411_p8), %s264_s11, 128  }
  0x62   : > { %950 = vsyncadd (%p1411_p8), %s264_s11, 4294967168  ;;  %s273_s17 = scalar_lea.sflag [#allocation6], %s1188_s16  ;;  %s276_s29 = scalar_lea.vmem [#allocation5], %s1191_s27 }
  0x63   : > { %952 = dma.done.wait (%p1411_p8), %s273_s17, 128  }
  0x64   : > { %954 = vsyncadd (%p1411_p8), %s273_s17, 4294967168  ;;  %vm327_vm0 = vcmask 7168   ;;  %s1206_s15 = scalar_lea.vmem [#allocation10], %s1191_s27  ;;  %v993_v0 = vmov 0.0   ;;  %v332_v1 = vld [vmem:[%s267_s10] sm:$0xff]  ;;  %v333_v2 = vld [vmem:[%s276_s29] sm:$0xff] }
  0x65   : > { %330 = vst.msk [vmem:[%s1206_s15] sm:$0xff] %vm327_vm0, %v993_v0  ;;  %v335_v3 = vadd.f32 1e-06, %v332_v1  ;;  %v336_v4 = vadd.f32 1e-06, %v333_v2  ;;  %vm334_vm2 = vcmp.gt.f32.partialorder %v333_v2, 0.0 }
  0x66   : > { %v342_v15 = vsel %vm334_vm2, 1.0, %v993_v0  ;;  %s308_s30 = scalar_lea.vmem [#allocation8], %s1191_s27  ;;  %s1216_s25 = scalar_lea.vmem [#allocation11], %s1191_s27 }
  0x67   : > { %v337_v5 = vmul.f32 %v336_v4, %v333_v2  ;;  %v338_v6 = vmul.f32 %v335_v3, %v332_v1  ;;  %v340_v7 = vmul.f32 %v336_v4, %v335_v3  ;;  %vm341_vm1 = vcmp.lt.f32.partialorder %v335_v3, 0.0  ;;  %329 = vst.msk [vmem:[%s308_s30] sm:$0xff] %vm327_vm0, %v993_v0  ;;  %331 = vst.msk [vmem:[%s1216_s25] sm:$0xff] %vm327_vm0, %v993_v0  ;;  %s1221_s14 = scalar_lea.vmem [#allocation7], %s1191_s27  ;;  %s384_s28 = sand.u32 1, %s1059_s24  }
  0x68   : > { %328 = vst.msk [vmem:[%s1221_s14] sm:$0xff] %vm327_vm0, %v993_v0  ;;  %s662_s9 = sshll.u32 %s981_s21, 7  ;;  %s421_s12 = sshll.u32 %s308_s30, 4  ;;  %s1234_s12 = int_to_ptr.vmem [resolvable:$true] %s421_s12 }
  0x69   : > { %v339_v8 = vmax.f32 %v337_v5, %v338_v6  ;;  %v360_v9 = vmul.f32 1.5625, %v340_v7  ;;  %v350_v10 = vmul.f32 1.25, %v340_v7  ;;  %v370_v11 = vmul.f32 1.953125, %v340_v7  ;;  %s1231_s11 = scalar_lea.hbm %s1386_s3, %s662_s9  ;;  %s408_s27 = sshll.u32 %s1221_s14, 4  ;;  %s1246_s27 = int_to_ptr.vmem [resolvable:$true] %s408_s27 }
  0x6a   : > { %s434_s10 = sshll.u32 %s1206_s15, 4  ;;  %s1241_s21 = scalar_lea.hbm %s1385_s2, %s662_s9  ;;  %s1254_s10 = int_to_ptr.vmem [resolvable:$true] %s434_s10 }
  0x6b   : > { %vm361_vm3 = vcmp.lt.f32.partialorder %v339_v8, %v360_v9  ;;  %vm351_vm4 = vcmp.lt.f32.partialorder %v339_v8, %v350_v10  ;;  %vm371_vm7 = vcmp.lt.f32.partialorder %v339_v8, %v370_v11  ;;  %s447_s29 = sshll.u32 %s1216_s25, 4  ;;  %s1251_s1 = scalar_lea.hbm %s1387_s4, %s662_s9  ;;  %s1262_s29 = int_to_ptr.vmem [resolvable:$true] %s447_s29 }
  0x6c   : > { %vm362_vm5 = vmor %vm361_vm3, %vm341_vm1  ;;  %v359_v16 = vld [vmem:[%s1206_s15] sm:$0xff]  ;;  %s1264_s26 = scalar_lea.sflag [#allocation9], %s384_s28  ;;  %s811_s0 = scalar_lea.vmem %s1234_s12, 128 }
  0x6d   : > { %vm363_vm6 = vmand %vm362_vm5, %vm334_vm2  ;;  %p812_p0 = scmp.ne.s32.totalorder %s1234_s12, %s811_s0  ;;  %p1412_p5 = scmp.ne.s32.totalorder %s1401_s6, 0 }
  0x6e   : > { %v364_v12 = vsel %vm363_vm6, 1.0, %v993_v0  ;;  %vm352_vm8 = vmor %vm351_vm4, %vm341_vm1  ;;  %v349_v18 = vld [vmem:[%s308_s30] sm:$0xff]  ;;  %s994_s13 = smov [#allocation8]  }
  0x6f   : > { %365 = vadd.xlane.f32.xlu1 %v364_v12  ;;  %vm353_vm9 = vmand %vm352_vm8, %vm334_vm2  ;;  %v369_v21 = vld [vmem:[%s1216_s25] sm:$0xff]  ;;  %v343_v24 = vld [vmem:[%s1221_s14] sm:$0xff]  ;;  %p813_p7 = pnand %p812_p0, %p1412_p5  ;;  %s815_s22 = sshll.u32 %s994_s13, 4  ;;  %s816_s22 = int_to_ptr.vmem [resolvable:$false] %s815_s22 }
  0x70   : > { %v354_v13 = vsel %vm353_vm9, 1.0, %v993_v0  ;;  %vm372_vm10 = vmor %vm371_vm7, %vm341_vm1  ;;  %p818_p10 = scmp.lt.s32.totalorder %s1234_s12, %s816_s22 }
  0x71   : > { %355 = vadd.xlane.f32.xlu0 %v354_v13  ;;  %vm373_vm11 = vmand %vm372_vm10, %vm334_vm2  ;;  %p814_p4 = pneg %p813_p7 }
  0x72   : > { %v374_v14 = vsel %vm373_vm11, 1.0, %v993_v0 }
  0x73   : > { %375 = vadd.xlane.f32.xlu1 %v374_v14 }
  0x75   : > { %344 = vadd.xlane.f32.xlu0 %v342_v15 }
  0xfc   : > { %v366_v17 = vpop.xlane.xlu1 %365 }
  0xfd   : > { %v367_v19 = vadd.f32 %v366_v17, %v359_v16 }
  0xfe   : > { %v356_v20 = vpop.xlane.xlu0 %355 }
  0xff   : > { %368 = vst.msk [vmem:[%s1206_s15] sm:$0xff] %vm327_vm0, %v367_v19  ;;  %v357_v22 = vadd.f32 %v356_v20, %v349_v18  ;;  %s1260_s15 = scalar_lea.hbm %s1388_s5, %s662_s9 }
 0x100   : > { %v376_v23 = vpop.xlane.xlu1 %375 }
 0x101   : > { %358 = vst.msk [vmem:[%s308_s30] sm:$0xff] %vm327_vm0, %v357_v22  ;;  %v377_v25 = vadd.f32 %v376_v23, %v369_v21  ;;  %s817_s30 = scalar_lea.vmem %s816_s22, 256 }
 0x102   : > { %v345_v26 = vpop.xlane.xlu0 %344  ;;  %p819_p12 = scmp.lt.s32.totalorder %s817_s30, %s811_s0 }
 0x104   : > { %p820_p1 = por %p819_p12, %p818_p10 }
 0x106   : > { %p821_p2 = pnand %p820_p1, %p814_p4 }
 0x108   : > { %824 = shalt.err (!%p821_p2)
}
 0x109   : > { %s825_s28 = scalar_lea.hbm %s1231_s11, 128  ;;  %s829_s24 = scalar_lea.hbm %s1386_s3, 256 }
 0x10a   : > { %p826_p9 = scmp.ne.s32.totalorder %s1231_s11, %s825_s28  ;;  %p830_p6 = scmp.lt.u32.totalorder %s1231_s11, %s1386_s3 }
 0x10b   : > { %p831_p13 = scmp.lt.u32.totalorder %s829_s24, %s825_s28  ;;  %p833_p0 = scmp.lt.u32.totalorder %s825_s28, %s1231_s11 }
 0x10c   : > { %p827_p11 = pnand %p826_p9, %p1412_p5 }
 0x10d   : > { %p832_p8 = por %p831_p13, %p830_p6 }
 0x10e   : > { %p828_p3 = pneg %p827_p11 }
 0x10f   : > { %p834_p7 = por %p833_p0, %p832_p8 }
 0x111   : > { %p835_p4 = pnand %p834_p7, %p828_p3 }
 0x113   : > { %838 = shalt.err (!%p835_p4)
}
 0x114   : > { %673 = dma.vmem_to_hbm [thread:$0]  (%p1412_p5), %s1234_s12, 128, %s1231_s11, %s1264_s26   ;;  %378 = vst.msk [vmem:[%s1216_s25] sm:$0xff] %vm327_vm0, %v377_v25  ;;  %v346_v27 = vadd.f32 %v345_v26, %v343_v24 }
 0x115   : > { %s839_s0 = scalar_lea.vmem %s1254_s10, 128  ;;  %s995_s30 = smov [#allocation10]  }
 0x116   : > { %p840_p10 = scmp.ne.s32.totalorder %s1254_s10, %s839_s0  ;;  %s843_s28 = sshll.u32 %s995_s30, 4  ;;  %s844_s28 = int_to_ptr.vmem [resolvable:$false] %s843_s28 }
 0x117   : > { %s845_s9 = scalar_lea.vmem %s844_s28, 256  ;;  %p846_p2 = scmp.lt.s32.totalorder %s1254_s10, %s844_s28 }
 0x118   : > { %p841_p12 = pnand %p840_p10, %p1412_p5  ;;  %p847_p9 = scmp.lt.s32.totalorder %s845_s9, %s839_s0 }
 0x11a   : > { %p842_p1 = pneg %p841_p12  ;;  %p848_p11 = por %p847_p9, %p846_p2 }
 0x11c   : > { %p849_p3 = pnand %p848_p11, %p842_p1 }
 0x11e   : > { %852 = shalt.err (!%p849_p3)
}
 0x11f   : > { %s853_s25 = scalar_lea.hbm %s1251_s1, 128  ;;  %s857_s17 = scalar_lea.hbm %s1387_s4, 256 }
 0x120   : > { %p854_p6 = scmp.ne.s32.totalorder %s1251_s1, %s853_s25  ;;  %p858_p0 = scmp.lt.u32.totalorder %s1251_s1, %s1387_s4 }
 0x121   : > { %p859_p7 = scmp.lt.u32.totalorder %s857_s17, %s853_s25  ;;  %p861_p10 = scmp.lt.u32.totalorder %s853_s25, %s1251_s1 }
 0x122   : > { %p855_p13 = pnand %p854_p6, %p1412_p5 }
 0x123   : > { %p860_p4 = por %p859_p7, %p858_p0 }
 0x124   : > { %p856_p8 = pneg %p855_p13 }
 0x125   : > { %p862_p12 = por %p861_p10, %p860_p4 }
 0x127   : > { %p863_p1 = pnand %p862_p12, %p856_p8 }
 0x129   : > { %866 = shalt.err (!%p863_p1)
}
 0x12a   : > { %674 = dma.vmem_to_hbm [thread:$0]  (%p1412_p5), %s1254_s10, 128, %s1251_s1, %s1264_s26  }
 0x12b   : > { %s395_s22 = scalar_lea.sflag [#allocation12], %s1188_s16  ;;  %s867_s0 = scalar_lea.vmem %s1262_s29, 128 }
 0x12c   : > { %p868_p2 = scmp.ne.s32.totalorder %s1262_s29, %s867_s0  ;;  %s996_s30 = smov [#allocation11]  }
 0x12d   : > { %s871_s28 = sshll.u32 %s996_s30, 4  ;;  %s872_s28 = int_to_ptr.vmem [resolvable:$false] %s871_s28 }
 0x12e   : > { %p869_p9 = pnand %p868_p2, %p1412_p5  ;;  %s873_s9 = scalar_lea.vmem %s872_s28, 256 }
 0x12f   : > { %p874_p3 = scmp.lt.s32.totalorder %s1262_s29, %s872_s28  ;;  %p875_p6 = scmp.lt.s32.totalorder %s873_s9, %s867_s0 }
 0x130   : > { %p870_p11 = pneg %p869_p9 }
 0x131   : > { %p876_p13 = por %p875_p6, %p874_p3 }
 0x133   : > { %p877_p8 = pnand %p876_p13, %p870_p11 }
 0x135   : > { %880 = shalt.err (!%p877_p8)
}
 0x136   : > { %s881_s1 = scalar_lea.hbm %s1260_s15, 128  ;;  %s885_s25 = scalar_lea.hbm %s1388_s5, 256 }
 0x137   : > { %p882_p0 = scmp.ne.s32.totalorder %s1260_s15, %s881_s1  ;;  %p886_p10 = scmp.lt.u32.totalorder %s1260_s15, %s1388_s5 }
 0x138   : > { %p887_p12 = scmp.lt.u32.totalorder %s885_s25, %s881_s1  ;;  %p889_p2 = scmp.lt.u32.totalorder %s881_s1, %s1260_s15 }
 0x139   : > { %p883_p7 = pnand %p882_p0, %p1412_p5 }
 0x13a   : > { %p888_p1 = por %p887_p12, %p886_p10 }
 0x13b   : > { %p884_p4 = pneg %p883_p7 }
 0x13c   : > { %p890_p9 = por %p889_p2, %p888_p1 }
 0x13e   : > { %p891_p11 = pnand %p890_p9, %p884_p4 }
 0x140   : > { %894 = shalt.err (!%p891_p11)
}
 0x141   : > { %675 = dma.vmem_to_hbm [thread:$0]  (%p1412_p5), %s1262_s29, 128, %s1260_s15, %s395_s22   ;;  %348 = vst.msk [vmem:[%s1221_s14] sm:$0xff] %vm327_vm0, %v346_v27 }
 0x142   : > { %s380_s17 = scalar_lea.sflag [#allocation4], %s1188_s16  ;;  %s895_s24 = scalar_lea.vmem %s1246_s27, 128 }
 0x143   : > { %p896_p3 = scmp.ne.s32.totalorder %s1246_s27, %s895_s24  ;;  %s997_s13 = smov [#allocation7]  }
 0x144   : > { %s899_s0 = sshll.u32 %s997_s13, 4  ;;  %s900_s0 = int_to_ptr.vmem [resolvable:$false] %s899_s0 }
 0x145   : > { %p897_p6 = pnand %p896_p3, %p1412_p5  ;;  %s901_s30 = scalar_lea.vmem %s900_s0, 256 }
 0x146   : > { %p902_p8 = scmp.lt.s32.totalorder %s1246_s27, %s900_s0  ;;  %p903_p0 = scmp.lt.s32.totalorder %s901_s30, %s895_s24 }
 0x147   : > { %p898_p13 = pneg %p897_p6 }
 0x148   : > { %p904_p7 = por %p903_p0, %p902_p8 }
 0x14a   : > { %p905_p4 = pnand %p904_p7, %p898_p13 }
 0x14c   : > { %908 = shalt.err (!%p905_p4)
}
 0x14d   : > { %s909_s16 = scalar_lea.hbm %s1241_s21, 128  ;;  %s913_s15 = scalar_lea.hbm %s1385_s2, 256 }
 0x14e   : > { %p910_p10 = scmp.ne.s32.totalorder %s1241_s21, %s909_s16  ;;  %p914_p2 = scmp.lt.u32.totalorder %s1241_s21, %s1385_s2 }
 0x14f   : > { %p915_p9 = scmp.lt.u32.totalorder %s913_s15, %s909_s16  ;;  %p917_p3 = scmp.lt.u32.totalorder %s909_s16, %s1241_s21 }
 0x150   : > { %p911_p12 = pnand %p910_p10, %p1412_p5 }
 0x151   : > { %p916_p11 = por %p915_p9, %p914_p2 }
 0x152   : > { %p912_p1 = pneg %p911_p12 }
 0x153   : > { %p918_p6 = por %p917_p3, %p916_p11 }
 0x155   : > { %p919_p13 = pnand %p918_p6, %p912_p1 }
 0x157   : > { %922 = shalt.err (!%p919_p13)
}
 0x158   : > { %672 = dma.vmem_to_hbm [thread:$0]  (%p1412_p5), %s1246_s27, 128, %s1241_s21, %s380_s17  }
 0x159 PF: > { %s459_s9 = sand.u32 1, %s969_s18   ;;  %p1413_p8 = scmp.ne.s32.totalorder %s1402_s8, 0 }
 0x15a   : > { %p1414_p0 = scmp.ge.s32.totalorder %s989_s23, 2  ;;  %s460_s1 = scalar_lea.sflag [#allocation4], %s459_s9 }
 0x15c   : > { %p688_p7 = pnand %p1414_p0, %p1413_p8 }
 0x15e   : > { %956 = dma.done.wait (!%p688_p7), %s460_s1, 128  }
 0x15f   : > { %958 = vsyncadd (!%p688_p7), %s460_s1, 4294967168  ;;  %s1415_s26 = sadd.s32 4294967294, %s989_s23  }
 0x160   : > { %s468_s10 = sand.u32 1, %s1415_s26  }
 0x161   : > { %s469_s25 = scalar_lea.sflag [#allocation9], %s468_s10 }
 0x162   : > { %960 = dma.done.wait (!%p688_p7), %s469_s25, 256  }
 0x163   : > { %962 = vsyncadd (!%p688_p7), %s469_s25, 4294967040  ;;  %s487_s6 = scalar_lea.sflag [#allocation12], %s459_s9 }
 0x164   : > { %964 = dma.done.wait (!%p688_p7), %s487_s6, 128  }
 0x165   : > { %966 = vsyncadd (!%p688_p7), %s487_s6, 4294967168  ;;  %s31_s23 = sadd.s32 1, %s989_s23   ;;  %s1416_s21 = sld [smem:[#allocation18_spill]] }
 0x166   : > { %p28_p5 = scmp.ge.s32.totalorder %s31_s23, 4   ;;  %s1417_s22 = sld [smem:[#allocation19_spill]] }
 0x167   : > { %s1418_s18 = smov %s973_s19  ;;  %s1419_s19 = smov %s977_s20 }
 0x168   : > { %s1420_s20 = smov %s1090_s7  ;;  %30 = sbr.rel (!%p28_p5) target bundleno = 15 (0xf), region = 139 }
 0x16f   :  { %492 = vsyncpa [#allocation3], 1 }
 0x170   :  { %494 = vsyncpa [#allocation3 + $0x1], 1 }
 0x171   :  { %495 = vsyncpa [#allocation6], 1 }
 0x172   :  { %497 = vsyncpa [#allocation6 + $0x1], 1 }
 0x173   :  { %498 = vsyncpa [#allocation4], 1 }
 0x174   :  { %500 = vsyncpa [#allocation4 + $0x1], 1 }
 0x175   :  { %501 = vsyncpa [#allocation9], 1 }
 0x176   :  { %503 = vsyncpa [#allocation9 + $0x1], 1 }
 0x177   :  { %504 = vsyncpa [#allocation12], 1 }
 0x178   :  { %506 = vsyncpa [#allocation12 + $0x1], 1 }

</bundles_post_ra>
